<compile_context>
chip_gen: v6e
topology: v6e:2x2x1
jax: 0.10.0
libtpu: 0.0.40
codegen_flags: <defaults>
</compile_context>

<pallas_src>
import jax
import jax.numpy as jnp
from jax.experimental import pallas as pl
from jax.experimental.pallas import tpu as pltpu


def _concat_kernel(x_ref, c_ref, cat_ref):
    # Lane-dense layout (concat axis flattened into the lane dim):
    #   x_ref : (1, 16)  -- x4, channel-major flatten: [c0 spatial | c1 spatial]
    #   c_ref : (1, 16)  -- concatTensor1, same flatten
    #   cat   : (1, 32)  -- [x_c0 | x_c1 | ct_c0 | ct_c1]
    cat_ref[:, 0:16] = x_ref[...]   # direct static-slice stores; no XLU work
    cat_ref[:, 16:32] = c_ref[...]


def model_forward(x4, concat_tensor1):
    """x4, concat_tensor1: float32 arrays of shape (1, 2, 2, 2, 2)."""
    n, c, d, h, w = x4.shape
    assert (n, c) == (1, 2) and concat_tensor1.shape == x4.shape
    spatial = d * h * w          # 8
    flat = c * spatial           # 16 (channel-major flatten -> lane axis)

    x_flat = x4.reshape(n, flat)
    c_flat = concat_tensor1.reshape(n, flat)

    vspec = lambda: pl.BlockSpec(memory_space=pltpu.MemorySpace.VMEM)

    cat_flat = pl.pallas_call(
        _concat_kernel,
        out_shape=jax.ShapeDtypeStruct((n, 2 * flat), x4.dtype),   # (1, 32)
        in_specs=[vspec(), vspec()],
        out_specs=vspec(),
        cost_estimate=pl.CostEstimate(
            flops=0, transcendentals=0, bytes_accessed=256),
    )(x_flat, c_flat)

    concatenated = cat_flat.reshape(n, 2 * c, d, h, w)             # (1,4,2,2,2)

    # split(x4, [1, 1], dim=1): pure views of the input — produced in the
    # wrapper as plain slices, not by the kernel (see performance review).
    split_tensors = (x4[:, 0:1], x4[:, 1:2])
    return concatenated, split_tensors


def init_unused_feature_params():
    # Deterministic init of the (unused) BatchNorm2d(32) affine params,
    # mirroring nn.BatchNorm2d defaults; never touched by forward.
    return {
        name: {
            "weight": jnp.ones((32,), jnp.float32),
            "bias": jnp.zeros((32,), jnp.float32),
            "running_mean": jnp.zeros((32,), jnp.float32),
            "running_var": jnp.ones((32,), jnp.float32),
        }
        for name in ("bn_inner", "bn_outer")
    }


if __name__ == "__main__":
    key = jax.random.PRNGKey(0)
    k1, k2 = jax.random.split(key)
    x4 = jax.random.normal(k1, (1, 2, 2, 2, 2), dtype=jnp.float32)
    concat_tensor1 = jax.random.normal(k2, (1, 2, 2, 2, 2), dtype=jnp.float32)

    _ = init_unused_feature_params()  # module constructs these but never uses them

    concatenated, splits = jax.block_until_ready(
        model_forward(x4, concat_tensor1))

    # Correctness check against plain-JAX reference.
    ref = jnp.concatenate([x4[:, 0:1], x4[:, 1:2], concat_tensor1], axis=1)
    assert concatenated.shape == (1, 4, 2, 2, 2)
    assert jnp.allclose(concatenated, ref)
    assert splits[0].shape == (1, 1, 2, 2, 2) and splits[1].shape == (1, 1, 2, 2, 2)
    assert jnp.allclose(splits[0], x4[:, 0:1])
    assert jnp.allclose(splits[1], x4[:, 1:2])

    print("KERNEL_OK")
</pallas_src>

<mosaic_0001>
module attributes {stable_mosaic.version = 11 : i64} {
  func.func @_concat_kernel(%arg0: memref<1x16xf32, #tpu.memory_space<vmem>>, %arg1: memref<1x16xf32, #tpu.memory_space<vmem>>, %arg2: memref<1x32xf32, #tpu.memory_space<vmem>>) attributes {dimension_semantics = [], scalar_prefetch = 0 : i64, scratch_operands = 0 : i64, tpu.core_type = #tpu.core_type<tc>} {
    %c0 = arith.constant 0 : index
    %c0_0 = arith.constant 0 : index
    %0 = vector.load %arg0[%c0, %c0_0] : memref<1x16xf32, #tpu.memory_space<vmem>>, vector<1x16xf32>
    %c0_1 = arith.constant 0 : index
    %c0_2 = arith.constant 0 : index
    %1 = vector.load %arg2[%c0_1, %c0_2] : memref<1x32xf32, #tpu.memory_space<vmem>>, vector<1x16xf32>
    tpu.vector_store %arg2[%c0_1, %c0_2], %0 {strides = array<i32>} : memref<1x32xf32, #tpu.memory_space<vmem>>, vector<1x16xf32>,
    %c0_3 = arith.constant 0 : index
    %c0_4 = arith.constant 0 : index
    %2 = vector.load %arg1[%c0_3, %c0_4] : memref<1x16xf32, #tpu.memory_space<vmem>>, vector<1x16xf32>
    %c0_5 = arith.constant 0 : index
    %c16 = arith.constant 16 : index
    %3 = vector.load %arg2[%c0_5, %c16] : memref<1x32xf32, #tpu.memory_space<vmem>>, vector<1x16xf32>
    tpu.vector_store %arg2[%c0_5, %c16], %2 {strides = array<i32>} : memref<1x32xf32, #tpu.memory_space<vmem>>, vector<1x16xf32>,
    return
  }
}

</mosaic_0001>

<bundles_post_ra>
// kernel: tpu_custom_call.1
= control target key start
LH: loop header
LB: loop body
LE: loop exit
PB: predicated region body
PF: predicated region fallthrough
CT: control target
= control target key end

     0   :  { %7 = vsyncpa [#allocation3], 0  ;;  %s128_s0 = inlined_call_operand.hbm [shape: f32[1,16], index: 0, kind: input, shape index: {}]   ;;  %s129_s1 = inlined_call_operand.vmem [shape: f32[1,16], index: 1, kind: input, shape index: {}]   ;;  %s130_s2 = inlined_call_operand.hbm [shape: f32[1,32], index: 2, kind: output, shape index: {}]  }
   0x1   :  { %8 = vsyncpa [#allocation4], 0  ;;  %s101_s9 = smov [#allocation2]  }
   0x2   :  { %s15_s10 = sshll.u32 %s101_s9, 4  ;;  %s16_s10 = int_to_ptr.vmem [resolvable:$true] %s15_s10 }
   0x3   :  { %s65_s11 = scalar_lea.vmem %s16_s10, 16  ;;  %s69_s12 = scalar_lea.vmem %s16_s10, 32 }
   0x4   :  { %p66_p0 = scmp.ne.s32.totalorder %s16_s10, %s65_s11  ;;  %p70_p1 = scmp.lt.s32.totalorder %s16_s10, %s16_s10 }
   0x5   :  { %p71_p2 = scmp.lt.s32.totalorder %s69_s12, %s65_s11 }
   0x7   :  { %p72_p3 = por %p71_p2, %p70_p1 }
   0x9   :  { %p73_p4 = pnand %p72_p3, %p66_p0 }
   0xb   :  { %76 = shalt.err (!%p73_p4)
}
   0xc   :  { %18 = dma.hbm_to_vmem [thread:$0]  %s128_s0, 16, %s16_s10, [#allocation3]  }
   0xd   :  { %97 = dma.done.wait [#allocation3], 16  }
   0xe   :  { %98 = vsyncadd [#allocation3], 4294967280  ;;  %vm25_vm0 = vcmask 122880   ;;  %v53_v0 = vld [vmem:[%s129_s1] ss:$0 sm:$0xff]  ;;  %s102_s17 = smov 16  }
   0xf   :  { %v24_v1 = vld [vmem:[#allocation2] sm:$0x1]  ;;  %33 = vrot.lane.b32.xlu0 %v53_v0, %s102_s17  ;;  %s103_s18 = smov [#allocation5]   ;;  %vm36_vm1 = vcmask 254080  }
  0x10   :  { %26 = vst.msk [vmem:[#allocation5] sm:$0x1] %vm25_vm0, %v24_v1  ;;  %s44_s19 = sshll.u32 %s103_s18, 4  ;;  %s45_s19 = int_to_ptr.vmem [resolvable:$true] %s44_s19 }
  0x11   :  { %s77_s20 = scalar_lea.vmem %s45_s19, 16  ;;  %s81_s0 = scalar_lea.vmem %s45_s19, 32 }
  0x12   :  { %p78_p5 = scmp.ne.s32.totalorder %s45_s19, %s77_s20  ;;  %p82_p6 = scmp.lt.s32.totalorder %s45_s19, %s45_s19 }
  0x13   :  { %p83_p7 = scmp.lt.s32.totalorder %s81_s0, %s77_s20 }
  0x15   :  { %p84_p8 = por %p83_p7, %p82_p6 }
  0x17   :  { %p85_p9 = pnand %p84_p8, %p78_p5 }
  0x81   :  { %v34_v2 = vpop.permute.xlu0 %33 }
  0x82   :  { %37 = vst.msk [vmem:[#allocation5] sm:$0x1] %vm36_vm1, %v34_v2 }
  0x83   :  { %88 = shalt.err (!%p85_p9)
}
  0x84   :  { %47 = dma.vmem_to_hbm [thread:$0]  %s45_s19, 16, %s130_s2, [#allocation4]  }
  0x85   :  { %99 = dma.done.wait [#allocation4], 16  }
  0x86   :  { %100 = vsyncadd [#allocation4], 4294967280 }
  0x87   :  { %51 = vsyncpa [#allocation3], 1 }
  0x88   :  { %52 = vsyncpa [#allocation4], 1 }

</bundles_post_ra>
